<compile_context>
chip_gen: v7x
topology: tpu7x:2x2x1
jax: 0.10.0
libtpu: 0.0.40
codegen_flags: <defaults>
</compile_context>

<pallas_src>
import functools

import jax
import jax.numpy as jnp
from jax.experimental import pallas as pl
from jax.experimental.pallas import tpu as pltpu


def _layer_norm_kernel(x_ref, g_ref, *rest, eps, has_bias):
    if has_bias:
        b_ref, o_ref = rest
    else:
        (o_ref,) = rest

    x = x_ref[0].astype(jnp.float32)                    # (C, Tb)

    # Channel statistics (reduction over the sublane axis, no reshape).
    mean = jnp.mean(x, axis=0, keepdims=True)           # (1, Tb)
    xc = x - mean
    var = jnp.mean(xc * xc, axis=0, keepdims=True)      # unbiased=False
    inv = jax.lax.rsqrt(var + eps)                      # (1, Tb)

    y = xc * inv * g_ref[...]                           # g is (C, 1), broadcasts
    if has_bias:
        y = y + b_ref[...]
    o_ref[0] = y.astype(o_ref.dtype)


def _pick_lane_tile(T):
    """Largest lane-dense tile (multiple of 128) dividing T, else full T."""
    for t in (2048, 1024, 512, 256, 128):
        if T % t == 0:
            return t
    return T  # non-multiple-of-128 T: single full-width block (masked stores)


def layer_norm(x, g, b=None):
    """Channel-wise LayerNorm. x: [B, C, H, W]; g/b: broadcastable to (C,)."""
    B, C, H, W = x.shape
    T = H * W
    eps = 1e-5 if x.dtype == jnp.dtype(jnp.float32) else 1e-3
    has_bias = b is not None

    x3 = x.reshape(B, C, T)
    g2 = jnp.asarray(g).reshape(C, 1).astype(jnp.float32)
    inputs = [x3, g2]
    if has_bias:
        inputs.append(jnp.asarray(b).reshape(C, 1).astype(jnp.float32))

    Tb = _pick_lane_tile(T)
    grid = (B, T // Tb)

    # VMEM budget: in + out blocks, double-buffered, plus params and headroom.
    itemsize = jnp.dtype(x.dtype).itemsize
    blk_bytes = C * Tb * itemsize
    vmem_bytes = 2 * 2 * blk_bytes + 4 * C * 8 + (2 << 20)
    vmem_bytes = int(min(max(vmem_bytes, 4 << 20), 64 << 20))

    x_spec = pl.BlockSpec((1, C, Tb), lambda bi, ti: (bi, 0, ti))
    p_spec = pl.BlockSpec((C, 1), lambda bi, ti: (0, 0))
    in_specs = [x_spec, p_spec] + ([p_spec] if has_bias else [])

    kernel = functools.partial(_layer_norm_kernel, eps=eps, has_bias=has_bias)

    out = pl.pallas_call(
        kernel,
        out_shape=jax.ShapeDtypeStruct((B, C, T), x.dtype),
        grid_spec=pltpu.PrefetchScalarGridSpec(
            num_scalar_prefetch=0,
            grid=grid,
            in_specs=in_specs,
            out_specs=x_spec,
        ),
        compiler_params=pltpu.CompilerParams(
            dimension_semantics=("parallel", "parallel"),
            vmem_limit_bytes=vmem_bytes,
        ),
    )(*inputs)

    return out.reshape(B, C, H, W)


def layer_norm_reference(x, g, b=None):
    """Pure-JAX reference mirroring LayerNorm.forward."""
    eps = 1e-5 if x.dtype == jnp.dtype(jnp.float32) else 1e-3
    xf = x.astype(jnp.float32)
    mean = xf.mean(axis=1, keepdims=True)
    var = ((xf - mean) ** 2).mean(axis=1, keepdims=True)
    out = (xf - mean) * jax.lax.rsqrt(var + eps) * jnp.asarray(g).reshape(
        1, -1, 1, 1).astype(jnp.float32)
    if b is not None:
        out = out + jnp.asarray(b).reshape(1, -1, 1, 1).astype(jnp.float32)
    return out.astype(x.dtype)


if __name__ == "__main__":
    # Small shapes consistent with the module: NCHW with C channels normalized
    # per pixel.  H*W = 256 keeps the lane axis dense (multiple of 128).
    B, C, H, W = 2, 32, 16, 16

    key = jax.random.PRNGKey(0)
    kx, kg, kb = jax.random.split(key, 3)

    x = jax.random.normal(kx, (B, C, H, W), dtype=jnp.float32)
    g = 1.0 + 0.1 * jax.random.normal(kg, (1, C, 1, 1), dtype=jnp.float32)

    # bias=False path (module default: self.b is None -> adds 0)
    out = jax.block_until_ready(layer_norm(x, g))
    ref = layer_norm_reference(x, g)
    assert out.shape == (B, C, H, W)
    assert jnp.allclose(out, ref, rtol=1e-5, atol=1e-5), (
        f"max abs err (no bias) {jnp.max(jnp.abs(out - ref))}")

    # bias=True path
    b = 0.1 * jax.random.normal(kb, (1, C, 1, 1), dtype=jnp.float32)
    out_b = jax.block_until_ready(layer_norm(x, g, b))
    ref_b = layer_norm_reference(x, g, b)
    assert jnp.allclose(out_b, ref_b, rtol=1e-5, atol=1e-5), (
        f"max abs err (bias) {jnp.max(jnp.abs(out_b - ref_b))}")

    print("KERNEL_OK")
</pallas_src>

<mosaic_0001>
module attributes {stable_mosaic.version = 11 : i64} {
  func.func @_layer_norm_kernel(%arg0: i32, %arg1: i32, %arg2: memref<1x32x256xf32, #tpu.memory_space<vmem>>, %arg3: memref<32x1xf32, #tpu.memory_space<vmem>>, %arg4: memref<1x32x256xf32, #tpu.memory_space<vmem>>) attributes {dimension_semantics = [#tpu.dimension_semantics<parallel>, #tpu.dimension_semantics<parallel>], iteration_bounds = array<i64: 2, 1>, scalar_prefetch = 0 : i64, scratch_operands = 0 : i64, tpu.core_type = #tpu.core_type<tc>, window_params = [{transform_indices = @transform_0, window_bounds = array<i64: 1, 32, 256>}, {pipeline_mode = #tpu.pipeline_mode<synchronous>, transform_indices = @transform_1, window_bounds = array<i64: 32, 1>}, {transform_indices = @transform_2, window_bounds = array<i64: 1, 32, 256>}]} {
    %c0 = arith.constant 0 : index
    %c0_0 = arith.constant 0 : index
    %c0_1 = arith.constant 0 : index
    %0 = vector.load %arg2[%c0, %c0_0, %c0_1] : memref<1x32x256xf32, #tpu.memory_space<vmem>>, vector<1x32x256xf32>
    %1 = vector.shape_cast %0 : vector<1x32x256xf32> to vector<32x256xf32>
    %cst = arith.constant dense<0.000000e+00> : vector<256xf32>
    %2 = vector.multi_reduction <add>, %1, %cst [0] : vector<32x256xf32> to vector<256xf32>
    %3 = vector.shape_cast %2 : vector<256xf32> to vector<1x256xf32>
    %cst_2 = arith.constant 3.200000e+01 : f32
    %4 = vector.broadcast %cst_2 : f32 to vector<1x256xf32>
    %5 = arith.divf %3, %4 : vector<1x256xf32>
    %6 = vector.broadcast %5 : vector<1x256xf32> to vector<32x256xf32>
    %7 = arith.subf %1, %6 : vector<32x256xf32>
    %8 = arith.mulf %7, %7 : vector<32x256xf32>
    %cst_3 = arith.constant dense<0.000000e+00> : vector<256xf32>
    %9 = vector.multi_reduction <add>, %8, %cst_3 [0] : vector<32x256xf32> to vector<256xf32>
    %10 = vector.shape_cast %9 : vector<256xf32> to vector<1x256xf32>
    %cst_4 = arith.constant 3.200000e+01 : f32
    %11 = vector.broadcast %cst_4 : f32 to vector<1x256xf32>
    %12 = arith.divf %10, %11 : vector<1x256xf32>
    %cst_5 = arith.constant 9.99999974E-6 : f32
    %13 = vector.broadcast %cst_5 : f32 to vector<1x256xf32>
    %14 = arith.addf %12, %13 : vector<1x256xf32>
    %15 = math.rsqrt %14 : vector<1x256xf32>
    %16 = vector.broadcast %15 : vector<1x256xf32> to vector<32x256xf32>
    %17 = arith.mulf %7, %16 : vector<32x256xf32>
    %c0_6 = arith.constant 0 : index
    %c0_7 = arith.constant 0 : index
    %18 = vector.load %arg3[%c0_6, %c0_7] : memref<32x1xf32, #tpu.memory_space<vmem>>, vector<32x1xf32>
    %19 = vector.broadcast %18 : vector<32x1xf32> to vector<32x256xf32>
    %20 = arith.mulf %17, %19 : vector<32x256xf32>
    %c0_8 = arith.constant 0 : index
    %c0_9 = arith.constant 0 : index
    %c0_10 = arith.constant 0 : index
    %21 = vector.load %arg4[%c0_8, %c0_9, %c0_10] : memref<1x32x256xf32, #tpu.memory_space<vmem>>, vector<1x32x256xf32>
    %22 = vector.shape_cast %21 : vector<1x32x256xf32> to vector<32x256xf32>
    %23 = vector.shape_cast %20 : vector<32x256xf32> to vector<1x32x256xf32>
    tpu.vector_store %arg4[%c0_8, %c0_9, %c0_10], %23 {strides = array<i32>} : memref<1x32x256xf32, #tpu.memory_space<vmem>>, vector<1x32x256xf32>,
    return
  }
  func.func @transform_0(%arg0: i32, %arg1: i32) -> (i32, i32, i32) {
    %c0_i32 = arith.constant 0 : i32
    %c0_i32_0 = arith.constant 0 : i32
    return %arg0, %c0_i32, %arg1 : i32, i32, i32
  }
  func.func @transform_1(%arg0: i32, %arg1: i32) -> (i32, i32) {
    %c0_i32 = arith.constant 0 : i32
    %c0_i32_0 = arith.constant 0 : i32
    %c0_i32_1 = arith.constant 0 : i32
    return %c0_i32, %c0_i32_0 : i32, i32
  }
  func.func @transform_2(%arg0: i32, %arg1: i32) -> (i32, i32, i32) {
    %c0_i32 = arith.constant 0 : i32
    %c0_i32_0 = arith.constant 0 : i32
    return %arg0, %c0_i32, %arg1 : i32, i32, i32
  }
}

</mosaic_0001>

<bundles_post_ra>
// kernel: tpu_custom_call.1
= control target key start
LH: loop header
LB: loop body
LE: loop exit
PB: predicated region body
PF: predicated region fallthrough
CT: control target
= control target key end

     0   :  { %7 = vsyncpa [#allocation3], 0  ;;  %s819_s0 = inlined_call_operand.hbm [shape: f32[2,32,256], index: 0, kind: input, shape index: {}]   ;;  %s820_s1 = inlined_call_operand.vmem [shape: f32[32,1], index: 1, kind: input, shape index: {}]   ;;  %s821_s2 = inlined_call_operand.hbm [shape: f32[2,32,256], index: 2, kind: output, shape index: {}]  }
   0x1   :  { %9 = vsyncpa [#allocation3 + $0x1], 0 }
   0x2   :  { %10 = vsyncpa [#allocation4], 0 }
   0x3   :  { %12 = vsyncpa [#allocation4 + $0x1], 0  ;;  %s628_s9 = smov 0   ;;  %s630_s10 = smov 0  }
   0x4   :  { %s632_s11 = smov 0   ;;  %s634_s12 = smov 0  }
   0x5   :  { %s636_s13 = smov 0   ;;  %s638_s14 = smov 0  }
   0x6 LB: > { %s402_s15 = sadd.s32 4294967295, %s604_s14   ;;  %s403_s16 = sadd.s32 4294967294, %s604_s14   ;;  %s604_s14 = sphi %s638_s14, %s18_s14   ;;  %s600_s13 = sphi %s636_s13, %s836_s13   ;;  %s596_s12 = sphi %s634_s12, %s835_s12   ;;  %s592_s11 = sphi %s632_s11, %s834_s11   ;;  %s588_s10 = sphi %s630_s10, %s833_s10   ;;  %s584_s9 = sphi %s628_s9, %s832_s9  }
   0x7   : > { %s30_s17 = sadd.s32 1, %s600_s13  ;;  %s39_s18 = sadd.s32 1, %s592_s11 }
   0x8   : > { %p32_p0 = scmp.ge.s32.totalorder %s30_s17, 2  ;;  %p46_p1 = scmp.ne.s32.totalorder %s592_s11, %s588_s10 }
   0x9   : > { %p47_p2 = scmp.eq.s32.totalorder %s604_s14, 0  ;;  %p52_p3 = scmp.ne.s32.totalorder %s588_s10, %s584_s9 }
   0xa   : > { %s838_s17 = smov (%p32_p0, %s30_s17), 0  ;;  %p53_p5 = scmp.eq.s32.totalorder %s402_s15, 0 }
   0xb   : > { %p669_p4 = por %p47_p2, %p46_p1  ;;  %s34_s20 = ssub.s32 %s600_s13, %s838_s17 }
   0xc   : > { %p99_p6 = scmp.eq.s32.totalorder %s402_s15, 1  ;;  %p37_p7 = scmp.eq.s32.totalorder %s34_s20, 0 }
   0xd   : > { %p675_p8 = por %p53_p5, %p52_p3  ;;  %p105_p10 = scmp.eq.s32.totalorder %s403_s16, 1 }
   0xe   : > { %p679_p9 = por %p99_p6, %p46_p1  ;;  %p431_p13 = scmp.lt.s32.totalorder %s604_s14, 2 }
   0xf   : > { %s684_s23 = scalar_select %p37_p7, %s592_s11, %s39_s18  }
  0x10   : > { %s825_s22 = scalar_select %p679_p9, 1, 0 }
  0x11   : > { %p686_p11 = por %p105_p10, %p52_p3  ;;  %s128_s25 = sand.u32 1, %s592_s11  }
  0x12   : > { %s406_s26 = sshll.u32 %s128_s25, 6  ;;  %s417_s27 = sshll.u32 %s600_s13, 10 }
  0x13   : > { %s826_s24 = scalar_select %p686_p11, 1, 0 }
  0x14   : > { %s697_s30 = scalar_lea.hbm %s819_s0, %s417_s27  ;;  %s132_s3 = scalar_lea.vmem [#allocation2], %s406_s26 }
  0x15   : > { %s141_s4 = sshll.u32 %s132_s3, 4  ;;  %p703_p0 = pnand %p431_p13, %p669_p4  ;;  %s699_s4 = int_to_ptr.vmem [resolvable:$true] %s141_s4 }
  0x16   : > { %s708_s6 = scalar_lea.sflag [#allocation3], %s128_s25  ;;  %s492_s7 = scalar_lea.hbm %s697_s30, 1024 }
  0x17   : > { %p493_p2 = scmp.ne.s32.totalorder %s697_s30, %s492_s7  ;;  %p494_p3 = pneg %p703_p0 }
  0x18   : > { %s497_s16 = scalar_lea.hbm %s819_s0, 2048  ;;  %p498_p4 = scmp.lt.u32.totalorder %s697_s30, %s819_s0 }
  0x19   : > { %p495_p5 = pnand %p494_p3, %p493_p2  ;;  %p499_p7 = scmp.lt.u32.totalorder %s497_s16, %s492_s7 }
  0x1a   : > { %p501_p13 = scmp.lt.u32.totalorder %s492_s7, %s697_s30 }
  0x1b   : > { %p496_p6 = pneg %p495_p5  ;;  %p500_p10 = por %p499_p7, %p498_p4 }
  0x1d   : > { %p502_p12 = por %p501_p13, %p500_p10 }
  0x1f   : > { %p503_p1 = pnand %p502_p12, %p496_p6 }
  0x21   : > { %506 = shalt.err (!%p503_p1)
}
  0x22   : > { %s507_s20 = scalar_lea.vmem %s699_s4, 1024  ;;  %s606_s25 = smov [#allocation2]  }
  0x23   : > { %p508_p2 = scmp.ne.s32.totalorder %s699_s4, %s507_s20  ;;  %s512_s26 = sshll.u32 %s606_s25, 4  ;;  %s513_s26 = int_to_ptr.vmem [resolvable:$false] %s512_s26 }
  0x24   : > { %s514_s27 = scalar_lea.vmem %s513_s26, 2048  ;;  %p515_p9 = scmp.lt.s32.totalorder %s699_s4, %s513_s26 }
  0x25   : > { %p510_p5 = pnand %p508_p2, %p494_p3  ;;  %p516_p4 = scmp.lt.s32.totalorder %s514_s27, %s507_s20 }
  0x27   : > { %p511_p11 = pneg %p510_p5  ;;  %p517_p7 = por %p516_p4, %p515_p9 }
  0x29   : > { %p518_p10 = pnand %p517_p7, %p511_p11 }
  0x2b   : > { %521 = shalt.err (!%p518_p10)
}
  0x2c   : > { %s607_s28 = smov 256   ;;  %s608_s29 = smov 16  }
  0x2d   : > { %426 = dma.hbm_to_vmem [thread:$0]  (!%p703_p0), %s697_s30, 1024, %s699_s4, %s708_s6, %s607_s28, %s607_s28, %s608_s29  }
  0x2e   : > { %p149_p12 = scmp.lt.s32.totalorder %s604_s14, 3  ;;  %p828_p1 = scmp.ge.s32.totalorder %s604_s14, 1 }
  0x30   : > { %p150_p3 = pnand %p828_p1, %p149_p12 }
  0x31   : > { %s740_s3 = sand.u32 (!%p150_p3), 1, %s588_s10  }
  0x32   : > { %153 = sbr.rel (%p150_p3) target bundleno = 210 (0xd2), region = 28  ;;  %s410_s7 = sshll.u32 (!%p150_p3), %s740_s3, 6 }
  0x33   : > { %s156_s8 = scalar_lea.sflag (!%p150_p3), [#allocation3], %s740_s3  ;;  %s159_s15 = scalar_lea.vmem (!%p150_p3), [#allocation2], %s410_s7 }
  0x39   : > { %575 = dma.done.wait (%p675_p8), %s156_s8, 1024  }
  0x3a   : > { %577 = vsyncadd (%p675_p8), %s156_s8, 4294966272  ;;  %v609_v0 = vmov 0   ;;  %v261_v1 = vld [vmem:[%s820_s1 + $0x10] sm:$0xff]  ;;  %v259_v2 = vld [vmem:[%s820_s1] sm:$0xff]  ;;  %s179_s20 = scalar_lea.vmem [#allocation5], %s410_s7  ;;  %s418_s26 = sshll.u32 %s596_s12, 10 }
  0x3b   : > { %487 = vset.pattern.permute.xlu1 %v609_v0  ;;  %486 = vset.pattern.permute.xlu0 %v609_v0  ;;  %v262_v3 = vld [vmem:[%s820_s1 + $0x18] sm:$0xff]  ;;  %v260_v4 = vld [vmem:[%s820_s1 + $0x8] sm:$0xff]  ;;  %v182_v5 = vld [vmem:[%s159_s15] sm:$0xff]  ;;  %s315_s25 = sshll.u32 %s179_s20, 4  ;;  %s770_s29 = scalar_lea.hbm %s821_s2, %s418_s26  ;;  %s765_s25 = int_to_ptr.vmem [resolvable:$true] %s315_s25 }
  0x3c   : > { %275 = vperm.xlu1 %487, %v261_v1   ;;  %265 = vperm.xlu0 %486, %v259_v2   ;;  %v184_v6 = vld [vmem:[%s159_s15 + $0x10] sm:$0xff]  ;;  %v183_v7 = vld [vmem:[%s159_s15 + $0x8] sm:$0xff]  ;;  %v185_v8 = vld [vmem:[%s159_s15 + $0x18] sm:$0xff]  ;;  %s300_s12 = scalar_lea.sflag [#allocation4], %s740_s3  ;;  %s522_s7 = scalar_lea.vmem %s765_s25, 1024 }
  0x3d   : > { %v190_v9 = vadd.f32 %v184_v6, %v182_v5  ;;  %v186_v10 = vld [vmem:[%s159_s15 + $0x20] sm:$0xff]  ;;  %v199_v11 = vadd.f32 %v185_v8, %v183_v7  ;;  %v187_v12 = vld [vmem:[%s159_s15 + $0x28] sm:$0xff]  ;;  %v188_v14 = vld [vmem:[%s159_s15 + $0x30] sm:$0xff]  ;;  %p523_p8 = scmp.ne.s32.totalorder %s765_s25, %s522_s7  ;;  %p829_p9 = scmp.ne.s32.totalorder %s825_s22, 0 }
  0x3e   : > { %v189_v16 = vld [vmem:[%s159_s15 + $0x38] sm:$0xff]  ;;  %s610_s8 = smov [#allocation5]  }
  0x3f   : > { %v191_v13 = vadd.f32 %v190_v9, %v186_v10  ;;  %v200_v15 = vadd.f32 %v199_v11, %v187_v12  ;;  %p524_p11 = pnand %p523_p8, %p829_p9  ;;  %s526_s15 = sshll.u32 %s610_s8, 4  ;;  %s527_s15 = int_to_ptr.vmem [resolvable:$false] %s526_s15 }
  0x40   : > { %280 = vperm.xlu1 %487, %v262_v3   ;;  %270 = vperm.xlu0 %486, %v260_v4   ;;  %s528_s30 = scalar_lea.vmem %s527_s15, 2048  ;;  %p529_p6 = scmp.lt.s32.totalorder %s765_s25, %s527_s15 }
  0x41   : > { %v192_v17 = vadd.f32 %v191_v13, %v188_v14  ;;  %v201_v18 = vadd.f32 %v200_v15, %v189_v16  ;;  %p525_p0 = pneg %p524_p11  ;;  %p530_p13 = scmp.lt.s32.totalorder %s528_s30, %s522_s7 }
  0x43   : > { %v193_v19 = vrot.slane %v192_v17, 4  ;;  %v202_v20 = vrot.slane %v201_v18, 4  ;;  %p531_p2 = por %p530_p13, %p529_p6 }
  0x45   : > { %v194_v21 = vadd.f32 %v193_v19, %v192_v17  ;;  %v203_v22 = vadd.f32 %v202_v20, %v201_v18  ;;  %p532_p5 = pnand %p531_p2, %p525_p0 }
  0x47   : > { %v195_v23 = vrot.slane %v194_v21, 2  ;;  %v204_v24 = vrot.slane %v203_v22, 2 }
  0x49   : > { %v196_v25 = vadd.f32 %v195_v23, %v194_v21  ;;  %v205_v26 = vadd.f32 %v204_v24, %v203_v22 }
  0x4b   : > { %v197_v27 = vrot.slane %v196_v25, 1  ;;  %v206_v28 = vrot.slane %v205_v26, 1 }
  0x4d   : > { %v198_v29 = vadd.f32 %v197_v27, %v196_v25  ;;  %v207_v30 = vadd.f32 %v206_v28, %v205_v26 }
  0x4f   : > { %v209_v31 = vmul.f32 0.03125, %v198_v29  ;;  %v210_v32 = vmul.f32 0.03125, %v207_v30 }
  0x51   : > { %v211_v33 = vsub.f32 %v182_v5, %v209_v31  ;;  %v213_v34 = vsub.f32 %v184_v6, %v209_v31  ;;  %v212_v35 = vsub.f32 %v183_v7, %v210_v32  ;;  %v214_v36 = vsub.f32 %v185_v8, %v210_v32 }
  0x52   : > { %v215_v37 = vsub.f32 %v186_v10, %v209_v31  ;;  %v216_v40 = vsub.f32 %v187_v12, %v210_v32  ;;  %v217_v43 = vsub.f32 %v188_v14, %v209_v31  ;;  %v218_v46 = vsub.f32 %v189_v16, %v210_v32 }
  0x53   : > { %v219_v38 = vmul.f32 %v211_v33, %v211_v33  ;;  %v221_v39 = vmul.f32 %v213_v34, %v213_v34  ;;  %v220_v41 = vmul.f32 %v212_v35, %v212_v35  ;;  %v222_v42 = vmul.f32 %v214_v36, %v214_v36 }
  0x54   : > { %v223_v44 = vmul.f32 %v215_v37, %v215_v37  ;;  %v224_v47 = vmul.f32 %v216_v40, %v216_v40  ;;  %v225_v49 = vmul.f32 %v217_v43, %v217_v43  ;;  %v226_v51 = vmul.f32 %v218_v46, %v218_v46 }
  0x55   : > { %v227_v45 = vadd.f32 %v221_v39, %v219_v38  ;;  %v236_v48 = vadd.f32 %v222_v42, %v220_v41 }
  0x57   : > { %v228_v50 = vadd.f32 %v227_v45, %v223_v44  ;;  %v237_v52 = vadd.f32 %v236_v48, %v224_v47 }
  0x59   : > { %v229_v53 = vadd.f32 %v228_v50, %v225_v49  ;;  %v238_v54 = vadd.f32 %v237_v52, %v226_v51 }
  0x5b   : > { %v230_v55 = vrot.slane %v229_v53, 4  ;;  %v239_v56 = vrot.slane %v238_v54, 4 }
  0x5d   : > { %v231_v57 = vadd.f32 %v230_v55, %v229_v53  ;;  %v240_v58 = vadd.f32 %v239_v56, %v238_v54 }
  0x5f   : > { %v232_v59 = vrot.slane %v231_v57, 2  ;;  %v241_v60 = vrot.slane %v240_v58, 2 }
  0x61   : > { %v233_v61 = vadd.f32 %v232_v59, %v231_v57  ;;  %v242_v62 = vadd.f32 %v241_v60, %v240_v58 }
  0x63   : > { %v234_v63 = vrot.slane %v233_v61, 1  ;;  %v243_v0 = vrot.slane %v242_v62, 1 }
  0x65   : > { %v235_v1 = vadd.f32 %v234_v63, %v233_v61  ;;  %v244_v2 = vadd.f32 %v243_v0, %v242_v62 }
  0x67   : > { %v245_v3 = vmul.f32 0.03125, %v235_v1  ;;  %v246_v4 = vmul.f32 0.03125, %v244_v2 }
  0x69   : > { %v247_v5 = vadd.f32 1e-05, %v245_v3  ;;  %v248_v6 = vadd.f32 1e-05, %v246_v4 }
  0x6b   : > { %488 = vrsqrt.f32 %v247_v5 }
  0x6c   : > { %490 = vrsqrt.f32 %v248_v6 }
  0x75   : > { %v489_v7 = vpop.eup %488 }
  0x76   : > { %v491_v8 = vpop.eup %490  ;;  %v255_v9 = vmul.f32 %v489_v7, %v215_v37  ;;  %v251_v11 = vmul.f32 %v489_v7, %v211_v33  ;;  %v257_v15 = vmul.f32 %v489_v7, %v217_v43  ;;  %v253_v17 = vmul.f32 %v489_v7, %v213_v34 }
  0x77   : > { %v256_v10 = vmul.f32 %v491_v8, %v216_v40  ;;  %v252_v12 = vmul.f32 %v491_v8, %v212_v35  ;;  %v258_v16 = vmul.f32 %v491_v8, %v218_v46  ;;  %v254_v18 = vmul.f32 %v491_v8, %v214_v36 }
  0xbb   : > { %v276_v13 = vpop.permute.xlu1 %275  ;;  %v266_v14 = vpop.permute.xlu0 %265 }
  0xbc   : > { %v287_v19 = vmul.f32 %v276_v13, %v255_v9  ;;  %v288_v20 = vmul.f32 %v276_v13, %v256_v10  ;;  %v283_v21 = vmul.f32 %v266_v14, %v251_v11  ;;  %v284_v22 = vmul.f32 %v266_v14, %v252_v12 }
  0xbe   : > { %295 = vst [vmem:[%s179_s20 + $0x20] sm:$0xff] %v287_v19  ;;  %296 = vst [vmem:[%s179_s20 + $0x28] sm:$0xff] %v288_v20 }
  0xbf   : > { %291 = vst [vmem:[%s179_s20] sm:$0xff] %v283_v21  ;;  %292 = vst [vmem:[%s179_s20 + $0x8] sm:$0xff] %v284_v22  ;;  %v281_v23 = vpop.permute.xlu1 %280  ;;  %v271_v24 = vpop.permute.xlu0 %270 }
  0xc0   : > { %v289_v25 = vmul.f32 %v281_v23, %v257_v15  ;;  %v290_v26 = vmul.f32 %v281_v23, %v258_v16  ;;  %v285_v27 = vmul.f32 %v271_v24, %v253_v17  ;;  %v286_v28 = vmul.f32 %v271_v24, %v254_v18 }
  0xc2   : > { %297 = vst [vmem:[%s179_s20 + $0x30] sm:$0xff] %v289_v25  ;;  %298 = vst [vmem:[%s179_s20 + $0x38] sm:$0xff] %v290_v26 }
  0xc3   : > { %293 = vst [vmem:[%s179_s20 + $0x10] sm:$0xff] %v285_v27  ;;  %294 = vst [vmem:[%s179_s20 + $0x18] sm:$0xff] %v286_v28 }
  0xc4   : > { %535 = shalt.err (!%p532_p5)
}
  0xc5   : > { %s536_s4 = scalar_lea.hbm %s770_s29, 1024  ;;  %s540_s16 = scalar_lea.hbm %s821_s2, 2048 }
  0xc6   : > { %p537_p4 = scmp.ne.s32.totalorder %s770_s29, %s536_s4  ;;  %p541_p12 = scmp.lt.u32.totalorder %s770_s29, %s821_s2 }
  0xc7   : > { %p542_p1 = scmp.lt.u32.totalorder %s540_s16, %s536_s4  ;;  %p544_p8 = scmp.lt.u32.totalorder %s536_s4, %s770_s29 }
  0xc8   : > { %p538_p7 = pnand %p537_p4, %p829_p9 }
  0xc9   : > { %p543_p3 = por %p542_p1, %p541_p12 }
  0xca   : > { %p539_p10 = pneg %p538_p7 }
  0xcb   : > { %p545_p11 = por %p544_p8, %p543_p3 }
  0xcd   : > { %p546_p0 = pnand %p545_p11, %p539_p10 }
  0xcf   : > { %549 = shalt.err (!%p546_p0)
}
  0xd0   : > { %s611_s21 = smov 256   ;;  %s612_s20 = smov 16  }
  0xd1   : > { %421 = dma.vmem_to_hbm [thread:$0]  (%p829_p9), %s765_s25, 1024, %s770_s29, %s300_s12, %s611_s21, %s611_s21, %s612_s20  }
  0xd2 PF: > { %s330_s26 = sand.u32 1, %s584_s9   ;;  %p830_p6 = scmp.ne.s32.totalorder %s826_s24, 0 }
  0xd3   : > { %p831_p13 = scmp.ge.s32.totalorder %s604_s14, 2  ;;  %s331_s27 = scalar_lea.sflag [#allocation4], %s330_s26 }
  0xd5   : > { %p428_p2 = pnand %p831_p13, %p830_p6 }
  0xd7   : > { %579 = dma.done.wait (!%p428_p2), %s331_s27, 1024  }
  0xd8   : > { %581 = vsyncadd (!%p428_p2), %s331_s27, 4294966272  ;;  %s18_s14 = sadd.s32 1, %s604_s14   ;;  %s832_s9 = smov %s588_s10 }
  0xd9   : > { %p15_p5 = scmp.ge.s32.totalorder %s18_s14, 4   ;;  %s833_s10 = smov %s592_s11 }
  0xda   : > { %s834_s11 = smov %s684_s23  ;;  %s835_s12 = smov %s600_s13 }
  0xdb   : > { %s836_s13 = smov %s838_s17  ;;  %17 = sbr.rel (!%p15_p5) target bundleno = 6 (0x6), region = 73 }
  0xe2   :  { %336 = vsyncpa [#allocation3], 1 }
  0xe3   :  { %338 = vsyncpa [#allocation3 + $0x1], 1 }
  0xe4   :  { %339 = vsyncpa [#allocation4], 1 }
  0xe5   :  { %341 = vsyncpa [#allocation4 + $0x1], 1 }

</bundles_post_ra>
